<compile_context>
chip_gen: v7x
topology: tpu7x:2x2x1
jax: 0.10.0
libtpu: 0.0.40
codegen_flags: <defaults>
</compile_context>

<pallas_src>
import functools
import math

import jax
import jax.numpy as jnp
from jax.experimental import pallas as pl
from jax.experimental.pallas import tpu as pltpu

BF16 = jnp.bfloat16
LN_EPS = 1e-5
NEG_INF = float(jnp.finfo(jnp.float32).min)
VMEM_LIMIT = 64 * 1024 * 1024        # explicit scoped-VMEM cap (<= v7x physical)

# Tile sizes (clamped to the actual dims for small problems).
BLOCK_M = 256     # row tile for projections / FFN
BLOCK_F = 512     # FFN hidden tile (multiple of 128; streams fc1-N / fc2-K)
BLOCK_Q = 128     # query-row tile for attention
BLOCK_KV = 512    # key/value tile for attention (flash-style online softmax)


# ----------------------------------------------------------------------------
# Kernels
# ----------------------------------------------------------------------------


def _proj_kernel(x_ref, w_ref, b_ref, *o_refs):
    # x: (bm, K) f32/bf16, w: (K, Ntot) bf16, b: (1, Ntot) f32 -> split bf16 outs.
    y = jnp.dot(x_ref[...].astype(w_ref.dtype), w_ref[...],
                preferred_element_type=jnp.float32) + b_ref[...]
    off = 0
    for o in o_refs:
        n = o.shape[-1]
        o[...] = y[:, off:off + n].astype(o.dtype)
        off += n


def _flash_attn_kernel(q_ref, k_ref, v_ref, res_ref, wo_ref, bo_ref, g_ref, b_ref,
                       o_ref, m_ref, l_ref, acc_ref, *, num_heads, causal,
                       sq_total, skv_total, eps):
    # Grid: (batch, q-tiles, kv-tiles). kv axis is a reduction ("arbitrary");
    # m/l/acc are per-(batch, q-tile) running softmax statistics in VMEM scratch.
    kv = pl.program_id(2)
    bq = q_ref.shape[1]
    bkv = k_ref.shape[1]
    d = q_ref.shape[2]
    dh = d // num_heads

    @pl.when(kv == 0)
    def _init():
        m_ref[...] = jnp.full_like(m_ref, NEG_INF)
        l_ref[...] = jnp.zeros_like(l_ref)
        acc_ref[...] = jnp.zeros_like(acc_ref)

    q = q_ref[0]          # (bq, d)  bf16, already scaled by dh**-0.5 at pack time
    k = k_ref[0]          # (bkv, d) bf16
    v = v_ref[0]          # (bkv, d) bf16

    need_mask = causal or (skv_total % bkv != 0)
    mask = None
    if need_mask:
        q_start = pl.program_id(1) * bq
        k_start = kv * bkv
        row = jax.lax.broadcasted_iota(jnp.int32, (bq, bkv), 0) + q_start
        col = jax.lax.broadcasted_iota(jnp.int32, (bq, bkv), 1) + k_start
        mask = col < skv_total
        if causal:
            mask = jnp.logical_and(mask, col <= row + (skv_total - sq_total))

    for h in range(num_heads):
        lo, hi = h * dh, (h + 1) * dh
        s = jax.lax.dot_general(q[:, lo:hi], k[:, lo:hi],
                                (((1,), (1,)), ((), ())),
                                preferred_element_type=jnp.float32)    # (bq, bkv)
        if need_mask:
            s = jnp.where(mask, s, NEG_INF)
        m_prev = m_ref[h]                                              # (bq, 1)
        m_new = jnp.maximum(m_prev, jnp.max(s, axis=-1, keepdims=True))
        alpha = jnp.exp(m_prev - m_new)
        p = jnp.exp(s - m_new)
        if need_mask:
            p = jnp.where(mask, p, 0.0)        # robust to fully-masked kv blocks
        l_ref[h] = alpha * l_ref[h] + jnp.sum(p, axis=-1, keepdims=True)
        acc_ref[h] = alpha * acc_ref[h] + jnp.dot(
            p.astype(v.dtype), v[:, lo:hi], preferred_element_type=jnp.float32)
        m_ref[h] = m_new

    @pl.when(kv == pl.num_programs(2) - 1)
    def _finalize():
        # Merged out-projection: ONE K=d MXU matmul instead of H matmuls with K=dh.
        ctx = jnp.concatenate(
            [acc_ref[h] * pl.reciprocal(l_ref[h], approx=True)
             for h in range(num_heads)], axis=-1)                      # (bq, d) f32
        y = res_ref[0].astype(jnp.float32) + bo_ref[...] + jnp.dot(
            ctx.astype(wo_ref.dtype), wo_ref[...],
            preferred_element_type=jnp.float32)
        mean = jnp.mean(y, axis=-1, keepdims=True)
        var = jnp.mean((y - mean) ** 2, axis=-1, keepdims=True)
        o_ref[0] = ((y - mean) * jax.lax.rsqrt(var + eps) * g_ref[...]
                    + b_ref[...]).astype(o_ref.dtype)


def _ffn_ln_kernel(x_ref, w1_ref, b1_ref, w2_ref, b2_ref, g_ref, bt_ref,
                   o_ref, acc_ref, *, eps, f_total, bf):
    # Grid: (row tiles, FFN-dim tiles). acc_ref is an f32 VMEM accumulator.
    f = pl.program_id(1)

    @pl.when(f == 0)
    def _init():
        acc_ref[...] = jnp.zeros_like(acc_ref)

    x = x_ref[...]                                   # (bm, D) bf16 (also residual)
    w1 = w1_ref[...]                                 # (D, bf) bf16
    w2 = w2_ref[...]                                 # (bf, D) bf16
    h = jnp.dot(x, w1, preferred_element_type=jnp.float32) + b1_ref[...]
    h = jax.nn.gelu(h, approximate=False)            # exact-erf GELU (BART 'gelu')

    if f_total % bf != 0:
        # Guard the padded tail of the FFN dimension on the last (partial) block.
        col = jax.lax.broadcasted_iota(jnp.int32, h.shape, 1) + f * bf
        h = jnp.where(col < f_total, h, 0.0)
        row = jax.lax.broadcasted_iota(jnp.int32, w2.shape, 0) + f * bf
        w2 = jnp.where(row < f_total, w2, jnp.zeros_like(w2))

    acc_ref[...] += jnp.dot(h.astype(w2.dtype), w2,
                            preferred_element_type=jnp.float32)

    @pl.when(f == pl.num_programs(1) - 1)
    def _finalize():
        y = acc_ref[...] + b2_ref[...] + x_ref[...].astype(jnp.float32)
        mean = jnp.mean(y, axis=-1, keepdims=True)
        var = jnp.mean((y - mean) ** 2, axis=-1, keepdims=True)
        o_ref[...] = ((y - mean) * jax.lax.rsqrt(var + eps) * g_ref[...]
                      + bt_ref[...]).astype(o_ref.dtype)


# ----------------------------------------------------------------------------
# pallas_call wrappers
# ----------------------------------------------------------------------------


def fused_projection(x, w, b, out_dims, block_m=BLOCK_M):
    """x (M, K) @ w (K, sum(out_dims)) bf16 + b, split into bf16 outputs."""
    M, K = x.shape
    N = w.shape[1]
    bm = min(M, block_m)
    grid = (pl.cdiv(M, bm),)
    out_shape = tuple(jax.ShapeDtypeStruct((M, n), BF16) for n in out_dims)
    out_specs = tuple(pl.BlockSpec((bm, n), lambda i: (i, 0)) for n in out_dims)
    outs = pl.pallas_call(
        _proj_kernel,
        out_shape=out_shape,
        grid=grid,
        in_specs=[
            pl.BlockSpec((bm, K), lambda i: (i, 0)),
            pl.BlockSpec((K, N), lambda i: (0, 0)),
            pl.BlockSpec((1, N), lambda i: (0, 0)),
        ],
        out_specs=out_specs,
        compiler_params=pltpu.CompilerParams(
            dimension_semantics=("parallel",),
            vmem_limit_bytes=VMEM_LIMIT),
    )(x, w, b)
    if not isinstance(outs, (tuple, list)):
        outs = (outs,)
    return tuple(outs)


def fused_attention_block(q, k, v, residual, wo, bo, gamma, beta, *,
                          num_heads, causal, eps=LN_EPS, out_dtype=BF16,
                          block_q=BLOCK_Q, block_kv=BLOCK_KV):
    """KV-tiled multi-head attention + merged out-proj + residual + LayerNorm."""
    B, Sq, D = q.shape
    Skv = k.shape[1]
    dh = D // num_heads
    bq = min(Sq, block_q)
    bkv = min(Skv, block_kv)
    grid = (B, pl.cdiv(Sq, bq), pl.cdiv(Skv, bkv))
    kern = functools.partial(_flash_attn_kernel, num_heads=num_heads, causal=causal,
                             sq_total=Sq, skv_total=Skv, eps=eps)
    return pl.pallas_call(
        kern,
        out_shape=jax.ShapeDtypeStruct((B, Sq, D), out_dtype),
        grid=grid,
        in_specs=[
            pl.BlockSpec((1, bq, D), lambda b, i, kv: (b, i, 0)),    # q (bf16)
            pl.BlockSpec((1, bkv, D), lambda b, i, kv: (b, kv, 0)),  # k (bf16)
            pl.BlockSpec((1, bkv, D), lambda b, i, kv: (b, kv, 0)),  # v (bf16)
            pl.BlockSpec((1, bq, D), lambda b, i, kv: (b, i, 0)),    # residual
            pl.BlockSpec((D, D), lambda b, i, kv: (0, 0)),           # wo (bf16)
            pl.BlockSpec((1, D), lambda b, i, kv: (0, 0)),           # bo
            pl.BlockSpec((1, D), lambda b, i, kv: (0, 0)),           # ln gamma
            pl.BlockSpec((1, D), lambda b, i, kv: (0, 0)),           # ln beta
        ],
        out_specs=pl.BlockSpec((1, bq, D), lambda b, i, kv: (b, i, 0)),
        scratch_shapes=[
            pltpu.VMEM((num_heads, bq, 1), jnp.float32),    # running max
            pltpu.VMEM((num_heads, bq, 1), jnp.float32),    # running denom
            pltpu.VMEM((num_heads, bq, dh), jnp.float32),   # running context
        ],
        compiler_params=pltpu.CompilerParams(
            dimension_semantics=("parallel", "parallel", "arbitrary"),
            vmem_limit_bytes=VMEM_LIMIT),
    )(q, k, v, residual, wo, bo, gamma, beta)


def fused_ffn_ln(x, w1, b1, w2, b2, gamma, beta, *, eps=LN_EPS, out_dtype=None,
                 block_m=BLOCK_M, block_f=BLOCK_F):
    """fc1 -> GELU -> fc2 (streamed over the FFN dim) + residual + LayerNorm."""
    M, D = x.shape
    F = w1.shape[1]
    bm = min(M, block_m)
    bf = min(F, block_f)
    grid = (pl.cdiv(M, bm), pl.cdiv(F, bf))
    out_dtype = x.dtype if out_dtype is None else out_dtype
    kern = functools.partial(_ffn_ln_kernel, eps=eps, f_total=F, bf=bf)
    return pl.pallas_call(
        kern,
        out_shape=jax.ShapeDtypeStruct((M, D), out_dtype),
        grid=grid,
        in_specs=[
            pl.BlockSpec((bm, D), lambda i, f: (i, 0)),   # x (bf16, also residual)
            pl.BlockSpec((D, bf), lambda i, f: (0, f)),   # fc1 weight slab (bf16)
            pl.BlockSpec((1, bf), lambda i, f: (0, f)),   # fc1 bias slab
            pl.BlockSpec((bf, D), lambda i, f: (f, 0)),   # fc2 weight slab (bf16)
            pl.BlockSpec((1, D), lambda i, f: (0, 0)),    # fc2 bias
            pl.BlockSpec((1, D), lambda i, f: (0, 0)),    # ln gamma
            pl.BlockSpec((1, D), lambda i, f: (0, 0)),    # ln beta
        ],
        out_specs=pl.BlockSpec((bm, D), lambda i, f: (i, 0)),
        scratch_shapes=[pltpu.VMEM((bm, D), jnp.float32)],
        compiler_params=pltpu.CompilerParams(
            dimension_semantics=("parallel", "arbitrary"),
            vmem_limit_bytes=VMEM_LIMIT),
    )(x, w1, b1, w2, b2, gamma, beta)


# ----------------------------------------------------------------------------
# Layer glue (plain JAX)
# ----------------------------------------------------------------------------


def _to_heads(x_bsd, num_heads):
    B, S, D = x_bsd.shape
    return x_bsd.reshape(B, S, num_heads, D // num_heads).transpose(0, 2, 1, 3)


def _from_heads(x_bhsd):
    B, H, S, Dh = x_bhsd.shape
    return x_bhsd.transpose(0, 2, 1, 3).reshape(B, S, H * Dh)


def pack_params(params, num_heads):
    """One-time packing: concat/scale/cast the projection weights to bf16."""
    D = params["sa_q_w"].shape[0]
    scale = (D // num_heads) ** -0.5

    def row(b):
        return b.reshape(1, -1).astype(jnp.float32)

    return {
        "sa_wqkv": jnp.concatenate(
            [params["sa_q_w"] * scale, params["sa_k_w"], params["sa_v_w"]],
            axis=1).astype(BF16),
        "sa_bqkv": jnp.concatenate(
            [params["sa_q_b"] * scale, params["sa_k_b"], params["sa_v_b"]]
        ).reshape(1, -1).astype(jnp.float32),
        "sa_wo": params["sa_o_w"].astype(BF16),
        "sa_bo": row(params["sa_o_b"]),
        "sa_ln_g": row(params["sa_ln_g"]),
        "sa_ln_b": row(params["sa_ln_b"]),
        "ca_wq": (params["ca_q_w"] * scale).astype(BF16),
        "ca_bq": row(params["ca_q_b"] * scale),
        "ca_wkv": jnp.concatenate(
            [params["ca_k_w"], params["ca_v_w"]], axis=1).astype(BF16),
        "ca_bkv": jnp.concatenate(
            [params["ca_k_b"], params["ca_v_b"]]).reshape(1, -1).astype(jnp.float32),
        "ca_wo": params["ca_o_w"].astype(BF16),
        "ca_bo": row(params["ca_o_b"]),
        "ca_ln_g": row(params["ca_ln_g"]),
        "ca_ln_b": row(params["ca_ln_b"]),
        "fc1_w": params["fc1_w"].astype(BF16),
        "fc1_b": row(params["fc1_b"]),
        "fc2_w": params["fc2_w"].astype(BF16),
        "fc2_b": row(params["fc2_b"]),
        "final_ln_g": row(params["final_ln_g"]),
        "final_ln_b": row(params["final_ln_b"]),
    }


def encoder_cross_kv(packed, encoder_hidden_states):
    """Project the fixed encoder states to cross-attn K/V once per sequence
    (mirrors BartDecoderLayer.set_encoder_key_value_states)."""
    B, Senc, D = encoder_hidden_states.shape
    ke, ve = fused_projection(encoder_hidden_states.reshape(B * Senc, D),
                              packed["ca_wkv"], packed["ca_bkv"], (D, D))
    return ke.reshape(B, Senc, D), ve.reshape(B, Senc, D)


def bart_decoder_layer(packed, hidden_states, encoder_hidden_states, num_heads,
                       past_key=None, past_value=None, encoder_kv=None):
    """Pallas implementation of BartDecoderLayer.forward (inference mode)."""
    B, S, D = hidden_states.shape
    dt = hidden_states.dtype

    x2d = hidden_states.reshape(B * S, D)

    # --- self attention block (fused QKV proj, flash attn + out-proj + LN) ---
    q, k_new, v_new = fused_projection(x2d, packed["sa_wqkv"], packed["sa_bqkv"],
                                       (D, D, D))
    q = q.reshape(B, S, D)
    k_new = k_new.reshape(B, S, D)
    v_new = v_new.reshape(B, S, D)

    if past_key is not None:
        # TODO(synk): for incremental decoding, alias the KV cache with
        # input_output_aliases and scatter the new rows in-kernel instead of
        # re-copying the whole cache through HBM every step.
        k_all = jnp.concatenate([_from_heads(past_key).astype(BF16), k_new], axis=1)
        v_all = jnp.concatenate([_from_heads(past_value).astype(BF16), v_new], axis=1)
    else:
        k_all, v_all = k_new, v_new

    present_key = _to_heads(k_all, num_heads).astype(dt)
    present_value = _to_heads(v_all, num_heads).astype(dt)

    h = fused_attention_block(
        q, k_all, v_all, hidden_states,
        packed["sa_wo"], packed["sa_bo"], packed["sa_ln_g"], packed["sa_ln_b"],
        num_heads=num_heads, causal=True)

    # --- cross attention block ---
    (q2,) = fused_projection(h.reshape(B * S, D), packed["ca_wq"], packed["ca_bq"],
                             (D,))
    if encoder_kv is None:
        encoder_kv = encoder_cross_kv(packed, encoder_hidden_states)
    ke, ve = encoder_kv

    h2 = fused_attention_block(
        q2.reshape(B, S, D), ke, ve, h,
        packed["ca_wo"], packed["ca_bo"], packed["ca_ln_g"], packed["ca_ln_b"],
        num_heads=num_heads, causal=False)

    # --- feed-forward block (fc1 + GELU + fc2 + residual + LN fused) ---
    out = fused_ffn_ln(h2.reshape(B * S, D),
                       packed["fc1_w"], packed["fc1_b"],
                       packed["fc2_w"], packed["fc2_b"],
                       packed["final_ln_g"], packed["final_ln_b"],
                       out_dtype=dt)

    return out.reshape(B, S, D), present_key, present_value


# ----------------------------------------------------------------------------
# Pure-JAX reference with matched bf16 casting (for correctness checking)
# ----------------------------------------------------------------------------


def _mm(x, w):
    return jnp.dot(x.astype(BF16), w.astype(BF16),
                   preferred_element_type=jnp.float32)


def _ref_ln(x, g, b, eps=LN_EPS):
    m = jnp.mean(x, axis=-1, keepdims=True)
    v = jnp.mean((x - m) ** 2, axis=-1, keepdims=True)
    return (x - m) * jax.lax.rsqrt(v + eps) * g + b


def _ref_mha(xq, xkv, wq, bq, wk, bk, wv, bv, wo, bo, H, causal):
    B, Sq, D = xq.shape
    Skv = xkv.shape[1]
    Dh = D // H
    scale = Dh ** -0.5
    q = (_mm(xq.reshape(-1, D), wq * scale) + bq * scale).astype(BF16)
    k = (_mm(xkv.reshape(-1, D), wk) + bk).astype(BF16)
    v = (_mm(xkv.reshape(-1, D), wv) + bv).astype(BF16)
    q = q.reshape(B, Sq, H, Dh)
    k = k.reshape(B, Skv, H, Dh)
    v = v.reshape(B, Skv, H, Dh)
    s = jnp.einsum("bqhd,bkhd->bhqk", q, k, preferred_element_type=jnp.float32)
    if causal:
        row = jnp.arange(Sq)[:, None]
        col = jnp.arange(Skv)[None, :]
        s = jnp.where(col <= row + (Skv - Sq), s, jnp.finfo(jnp.float32).min)
    m = s.max(-1, keepdims=True)
    p = jnp.exp(s - m)
    p = p / p.sum(-1, keepdims=True)
    ctx = jnp.einsum("bhqk,bkhd->bqhd", p.astype(BF16), v,
                     preferred_element_type=jnp.float32).reshape(B, Sq, D)
    y = (_mm(ctx.reshape(-1, D), wo) + bo).reshape(B, Sq, D)
    pk = jnp.transpose(k, (0, 2, 1, 3)).astype(jnp.float32)
    pv = jnp.transpose(v, (0, 2, 1, 3)).astype(jnp.float32)
    return y, pk, pv


def ref_decoder_layer(p, x, enc, H):
    B, S, D = x.shape
    a, pk, pv = _ref_mha(x, x, p["sa_q_w"], p["sa_q_b"], p["sa_k_w"], p["sa_k_b"],
                         p["sa_v_w"], p["sa_v_b"], p["sa_o_w"], p["sa_o_b"], H, True)
    h = _ref_ln(x + a, p["sa_ln_g"], p["sa_ln_b"])
    a2, _, _ = _ref_mha(h, enc, p["ca_q_w"], p["ca_q_b"], p["ca_k_w"], p["ca_k_b"],
                        p["ca_v_w"], p["ca_v_b"], p["ca_o_w"], p["ca_o_b"], H, False)
    h2 = _ref_ln(h + a2, p["ca_ln_g"], p["ca_ln_b"])
    f1 = jax.nn.gelu(_mm(h2.reshape(-1, D), p["fc1_w"]) + p["fc1_b"],
                     approximate=False)
    f2 = (_mm(f1, p["fc2_w"]) + p["fc2_b"]).reshape(B, S, D)
    h3 = _ref_ln(h2 + f2, p["final_ln_g"], p["final_ln_b"])
    return h3, pk, pv


# ----------------------------------------------------------------------------
# Parameter init + main
# ----------------------------------------------------------------------------


def init_params(key, d_model, ffn_dim):
    names_lin = [
        ("sa_q", d_model, d_model), ("sa_k", d_model, d_model),
        ("sa_v", d_model, d_model), ("sa_o", d_model, d_model),
        ("ca_q", d_model, d_model), ("ca_k", d_model, d_model),
        ("ca_v", d_model, d_model), ("ca_o", d_model, d_model),
        ("fc1", d_model, ffn_dim), ("fc2", ffn_dim, d_model),
    ]
    params = {}
    for name, fan_in, fan_out in names_lin:
        key, kw, kb = jax.random.split(key, 3)
        # weights stored as (in, out), i.e. already transposed vs torch (out, in)
        params[f"{name}_w"] = (
            jax.random.normal(kw, (fan_in, fan_out), jnp.float32)
            / math.sqrt(fan_in))
        params[f"{name}_b"] = 0.02 * jax.random.normal(kb, (fan_out,), jnp.float32)
    for ln in ("sa_ln", "ca_ln", "final_ln"):
        params[f"{ln}_g"] = jnp.ones((d_model,), jnp.float32)
        params[f"{ln}_b"] = jnp.zeros((d_model,), jnp.float32)
    return params


if __name__ == "__main__":
    B, S, S_ENC = 2, 8, 8
    D_MODEL, N_HEADS, FFN_DIM = 32, 4, 64

    root = jax.random.PRNGKey(0)
    kp, kx, ke = jax.random.split(root, 3)
    params = init_params(kp, D_MODEL, FFN_DIM)
    packed = pack_params(params, N_HEADS)
    hidden_states = jax.random.normal(kx, (B, S, D_MODEL), jnp.float32)
    encoder_hidden_states = jax.random.normal(ke, (B, S_ENC, D_MODEL), jnp.float32)

    # Encoder K/V is fixed during decoding -> project once per sequence, not per
    # decoder-layer invocation.
    enc_kv = jax.block_until_ready(
        jax.jit(encoder_cross_kv)(packed, encoder_hidden_states))

    layer_fn = jax.jit(functools.partial(bart_decoder_layer, num_heads=N_HEADS))
    out, present_key, present_value = layer_fn(
        packed, hidden_states, encoder_hidden_states, encoder_kv=enc_kv)
    out = jax.block_until_ready(out)
    present_key = jax.block_until_ready(present_key)
    present_value = jax.block_until_ready(present_value)

    # correctness check against a pure-JAX reference with matched bf16 casting
    ref_out, ref_pk, ref_pv = ref_decoder_layer(
        params, hidden_states, encoder_hidden_states, N_HEADS)

    assert out.shape == (B, S, D_MODEL)
    assert present_key.shape == (B, N_HEADS, S, D_MODEL // N_HEADS)
    assert present_value.shape == (B, N_HEADS, S, D_MODEL // N_HEADS)
    # bf16 kernel boundaries + approx softmax reciprocal -> slightly looser tol
    assert jnp.allclose(out, ref_out, atol=3e-2, rtol=3e-2)
    assert jnp.allclose(present_key, ref_pk, atol=2e-2, rtol=2e-2)
    assert jnp.allclose(present_value, ref_pv, atol=2e-2, rtol=2e-2)

    print("KERNEL_OK")
</pallas_src>

<mosaic_0001>
module attributes {stable_mosaic.version = 11 : i64} {
  func.func @_proj_kernel(%arg0: i32, %arg1: memref<16x32xf32, #tpu.memory_space<vmem>>, %arg2: memref<32x64xbf16, #tpu.memory_space<vmem>>, %arg3: memref<1x64xf32, #tpu.memory_space<vmem>>, %arg4: memref<16x32xbf16, #tpu.memory_space<vmem>>, %arg5: memref<16x32xbf16, #tpu.memory_space<vmem>>) attributes {dimension_semantics = [#tpu.dimension_semantics<parallel>], iteration_bounds = array<i64: 1>, scalar_prefetch = 0 : i64, scratch_operands = 0 : i64, tpu.core_type = #tpu.core_type<tc>, window_params = [{transform_indices = @transform_0, window_bounds = array<i64: 16, 32>}, {pipeline_mode = #tpu.pipeline_mode<synchronous>, transform_indices = @transform_1, window_bounds = array<i64: 32, 64>}, {pipeline_mode = #tpu.pipeline_mode<synchronous>, transform_indices = @transform_2, window_bounds = array<i64: 1, 64>}, {transform_indices = @transform_3, window_bounds = array<i64: 16, 32>}, {transform_indices = @transform_4, window_bounds = array<i64: 16, 32>}]} {
    %c0 = arith.constant 0 : index
    %c0_0 = arith.constant 0 : index
    %0 = vector.load %arg1[%c0, %c0_0] : memref<16x32xf32, #tpu.memory_space<vmem>>, vector<16x32xf32>
    %1 = arith.truncf %0 : vector<16x32xf32> to vector<16x32xbf16>
    %c0_1 = arith.constant 0 : index
    %c0_2 = arith.constant 0 : index
    %2 = vector.load %arg2[%c0_1, %c0_2] : memref<32x64xbf16, #tpu.memory_space<vmem>>, vector<32x64xbf16>
    %cst = arith.constant dense<0.000000e+00> : vector<16x64xf32>
    %3 = tpu.matmul %1, %2, %cst {dimension_numbers = #tpu.dot_dimension_numbers<[1], [0], [0], [1], [0, 0, 1, 1], [], []>} : vector<16x32xbf16>, vector<32x64xbf16>, vector<16x64xf32> -> vector<16x64xf32>
    %c0_3 = arith.constant 0 : index
    %c0_4 = arith.constant 0 : index
    %4 = vector.load %arg3[%c0_3, %c0_4] : memref<1x64xf32, #tpu.memory_space<vmem>>, vector<1x64xf32>
    %5 = vector.broadcast %4 : vector<1x64xf32> to vector<16x64xf32>
    %6 = arith.addf %3, %5 : vector<16x64xf32>
    %7 = vector.extract_strided_slice %6 {offsets = [0, 0], sizes = [16, 32], strides = [1, 1]} : vector<16x64xf32> to vector<16x32xf32>
    %8 = arith.truncf %7 : vector<16x32xf32> to vector<16x32xbf16>
    %c0_5 = arith.constant 0 : index
    %c0_6 = arith.constant 0 : index
    %9 = vector.load %arg4[%c0_5, %c0_6] : memref<16x32xbf16, #tpu.memory_space<vmem>>, vector<16x32xbf16>
    tpu.vector_store %arg4[%c0_5, %c0_6], %8 {strides = array<i32>} : memref<16x32xbf16, #tpu.memory_space<vmem>>, vector<16x32xbf16>,
    %10 = vector.extract_strided_slice %6 {offsets = [0, 32], sizes = [16, 32], strides = [1, 1]} : vector<16x64xf32> to vector<16x32xf32>
    %11 = arith.truncf %10 : vector<16x32xf32> to vector<16x32xbf16>
    %c0_7 = arith.constant 0 : index
    %c0_8 = arith.constant 0 : index
    %12 = vector.load %arg5[%c0_7, %c0_8] : memref<16x32xbf16, #tpu.memory_space<vmem>>, vector<16x32xbf16>
    tpu.vector_store %arg5[%c0_7, %c0_8], %11 {strides = array<i32>} : memref<16x32xbf16, #tpu.memory_space<vmem>>, vector<16x32xbf16>,
    return
  }
  func.func @transform_0(%arg0: i32) -> (i32, i32) {
    %c0_i32 = arith.constant 0 : i32
    %c0_i32_0 = arith.constant 0 : i32
    return %arg0, %c0_i32 : i32, i32
  }
  func.func @transform_1(%arg0: i32) -> (i32, i32) {
    %c0_i32 = arith.constant 0 : i32
    %c0_i32_0 = arith.constant 0 : i32
    %c0_i32_1 = arith.constant 0 : i32
    return %c0_i32, %c0_i32_0 : i32, i32
  }
  func.func @transform_2(%arg0: i32) -> (i32, i32) {
    %c0_i32 = arith.constant 0 : i32
    %c0_i32_0 = arith.constant 0 : i32
    %c0_i32_1 = arith.constant 0 : i32
    return %c0_i32, %c0_i32_0 : i32, i32
  }
  func.func @transform_3(%arg0: i32) -> (i32, i32) {
    %c0_i32 = arith.constant 0 : i32
    %c0_i32_0 = arith.constant 0 : i32
    return %arg0, %c0_i32 : i32, i32
  }
  func.func @transform_4(%arg0: i32) -> (i32, i32) {
    %c0_i32 = arith.constant 0 : i32
    %c0_i32_0 = arith.constant 0 : i32
    return %arg0, %c0_i32 : i32, i32
  }
}

</mosaic_0001>

<bundles_post_ra>
// kernel: encoder_cross_kv.1
= control target key start
LH: loop header
LB: loop body
LE: loop exit
PB: predicated region body
PF: predicated region fallthrough
CT: control target
= control target key end

     0   :  { %10 = vsyncpa [#allocation3], 0  ;;  %s443_s0 = inlined_call_operand.hbm [shape: f32[16,32], index: 0, kind: input, shape index: {}]   ;;  %s444_s1 = inlined_call_operand.hbm [shape: bf16[32,64], index: 1, kind: input, shape index: {}]   ;;  %s445_s2 = inlined_call_operand.hbm [shape: f32[1,64], index: 2, kind: input, shape index: {}]   ;;  %s446_s3 = inlined_call_operand.hbm [shape: bf16[16,32], index: 3, kind: output, shape index: {0}]   ;;  %s447_s4 = inlined_call_operand.hbm [shape: bf16[16,32], index: 4, kind: output, shape index: {1}]  }
   0x1   :  { %11 = vsyncpa [#allocation6], 0 }
   0x2   :  { %12 = vsyncpa [#allocation4], 0 }
   0x3   :  { %13 = vsyncpa [#allocation10], 0  ;;  %s333_s15 = smov [#allocation5]   ;;  %s215_s19 = scalar_lea.hbm %s444_s1, 256 }
   0x4   :  { %s31_s16 = sshll.u32 %s333_s15, 4  ;;  %p216_p0 = scmp.ne.s32.totalorder %s444_s1, %s215_s19  ;;  %s32_s16 = int_to_ptr.vmem [resolvable:$true] %s31_s16 }
   0x5   :  { %p219_p1 = scmp.lt.u32.totalorder %s215_s19, %s444_s1 }
   0x7   :  { %p221_p2 = pnand %p219_p1, %p216_p0 }
   0x9   :  { %224 = shalt.err (!%p221_p2)
}
   0xa   :  { %s225_s24 = scalar_lea.vmem %s32_s16, 256  ;;  %p230_p4 = scmp.lt.s32.totalorder %s32_s16, %s32_s16 }
   0xb   :  { %p226_p3 = scmp.ne.s32.totalorder %s32_s16, %s225_s24  ;;  %p231_p5 = scmp.lt.s32.totalorder %s225_s24, %s225_s24 }
   0xd   :  { %p232_p6 = por %p231_p5, %p230_p4 }
   0xf   :  { %p233_p7 = pnand %p232_p6, %p226_p3 }
  0x11   :  { %236 = shalt.err (!%p233_p7)
}
  0x12   :  { %s334_s25 = smov 64   ;;  %s335_s26 = smov 4  }
  0x13   :  { %37 = dma.hbm_to_vmem [thread:$0]  %s444_s1, 256, %s32_s16, [#allocation6], %s334_s25, %s334_s25, %s335_s26  }
  0x14   :  { %s336_s29 = smov [#allocation2]   ;;  %s237_s7 = scalar_lea.hbm %s443_s0, 256 }
  0x15   :  { %s19_s30 = sshll.u32 %s336_s29, 4  ;;  %p238_p8 = scmp.ne.s32.totalorder %s443_s0, %s237_s7  ;;  %s20_s30 = int_to_ptr.vmem [resolvable:$true] %s19_s30 }
  0x16   :  { %p241_p9 = scmp.lt.u32.totalorder %s237_s7, %s443_s0 }
  0x18   :  { %p243_p10 = pnand %p241_p9, %p238_p8 }
  0x1a   :  { %246 = shalt.err (!%p243_p10)
}
  0x1b   :  { %s247_s12 = scalar_lea.vmem %s20_s30, 256  ;;  %p252_p12 = scmp.lt.s32.totalorder %s20_s30, %s20_s30 }
  0x1c   :  { %p248_p11 = scmp.ne.s32.totalorder %s20_s30, %s247_s12  ;;  %p253_p13 = scmp.lt.s32.totalorder %s247_s12, %s247_s12 }
  0x1e   :  { %p254_p0 = por %p253_p13, %p252_p12 }
  0x20   :  { %p255_p1 = pnand %p254_p0, %p248_p11 }
  0x22   :  { %258 = shalt.err (!%p255_p1)
}
  0x23   :  { %s337_s1 = smov 128   ;;  %s338_s13 = smov 8  }
  0x24   :  { %25 = dma.hbm_to_vmem [thread:$0]  %s443_s0, 256, %s20_s30, [#allocation3], %s337_s1, %s337_s1, %s338_s13  }
  0x25   :  { %s339_s16 = smov [#allocation7]   ;;  %s259_s20 = scalar_lea.hbm %s445_s2, 16 }
  0x26   :  { %s44_s17 = sshll.u32 %s339_s16, 4  ;;  %p260_p2 = scmp.ne.s32.totalorder %s445_s2, %s259_s20  ;;  %s45_s17 = int_to_ptr.vmem [resolvable:$true] %s44_s17 }
  0x27   :  { %p263_p3 = scmp.lt.u32.totalorder %s259_s20, %s445_s2 }
  0x29   :  { %p265_p4 = pnand %p263_p3, %p260_p2 }
  0x2b   :  { %268 = shalt.err (!%p265_p4)
}
  0x2c   :  { %s269_s27 = scalar_lea.vmem %s45_s17, 16  ;;  %s273_s0 = scalar_lea.vmem %s45_s17, 32 }
  0x2d   :  { %p270_p5 = scmp.ne.s32.totalorder %s45_s17, %s269_s27  ;;  %p274_p6 = scmp.lt.s32.totalorder %s45_s17, %s45_s17 }
  0x2e   :  { %p275_p7 = scmp.lt.s32.totalorder %s273_s0, %s269_s27 }
  0x30   :  { %p276_p8 = por %p275_p7, %p274_p6 }
  0x32   :  { %p277_p9 = pnand %p276_p8, %p270_p5 }
  0x34   :  { %280 = shalt.err (!%p277_p9)
}
  0x35   :  { %47 = dma.hbm_to_vmem [thread:$0]  %s445_s2, 16, %s45_s17, [#allocation6]  }
  0x36   :  { %325 = dma.done.wait [#allocation3], 256  }
  0x37   :  { %326 = vsyncadd [#allocation3], 4294967040 }
  0x38   :  { %327 = dma.done.wait [#allocation6], 272  }
  0x39   :  { %328 = vsyncadd [#allocation6], 4294967024  ;;  %v340_v0 = vmov 0.0   ;;  %vm341_vm0 = vmmov 0   ;;  %v213_v1 = vld [vmem:[#allocation5] sm:$0xff]   ;;  %v214_v2 = vld [vmem:[#allocation5 + $0x8] sm:$0xff]  }
  0x3a   :  { %193 = vmatprep.subr.bf16.mxu0 %v340_v0  ;;  %197 = vmatprep.mubr.msk.bf16.mxu0 %vm341_vm0, %v340_v0  ;;  %v58_v3 = vld [vmem:[#allocation2] sm:$0xff]  ;;  %v59_v4 = vld [vmem:[#allocation2 + $0x8] sm:$0xff]  ;;  %vm84_vm1 = vcmask 261120   ;;  %vm137_vm2 = vcmask 257024   ;;  %s342_s2 = smov [#allocation8]   ;;  %s343_s5 = smov 96  }
  0x3b   :  { %194 = vmatpush3.bf16.msra.mxu0 %v213_v1  ;;  %v60_v5 = vpack.c.bf16 %v59_v4, %v58_v3  ;;  %v182_v6 = vld [vmem:[#allocation7] ss:$0 sm:$0xff]  ;;  %s153_s30 = sshll.u32 %s342_s2, 4  ;;  %s154_s30 = int_to_ptr.vmem [resolvable:$true] %s153_s30 }
  0x3c   :  { %195 = vmatprep.subr.bf16.mxu0 %v340_v0  ;;  %s281_s6 = scalar_lea.vmem %s154_s30, 128  ;;  %p286_p11 = scmp.lt.s32.totalorder %s154_s30, %s154_s30 }
  0x3d   :  { %p282_p10 = scmp.ne.s32.totalorder %s154_s30, %s281_s6  ;;  %p287_p12 = scmp.lt.s32.totalorder %s281_s6, %s281_s6 }
  0x3f   :  { %196 = vmatpush3.bf16.msra.mxu0 %v214_v2  ;;  %p288_p13 = por %p287_p12, %p286_p11 }
  0x41   :  { %p289_p0 = pnand %p288_p13, %p282_p10 }
  0x42   :  { %198 = vmatmul.mubr.msk.bf16.vlgmr.msra.gmra.mrb[0].mxu0 %vm84_vm1, %v60_v5 }
 0x115   :  { %v122_v7 = vpop.f32.mrb[0].mxu0 }
 0x116   :  { %v123_v8 = vadd.f32 %v182_v6, %v122_v7  ;;  %v199_v9 = vpop.f32.mrb[1].mxu0 }
 0x117   :  { %v125_v10 = vpop.f32.mrb[2].mxu0 }
 0x118   :  { %v188_v11 = vpack.c.bf16 %v123_v8, %v123_v8  ;;  %v126_v12 = vadd.f32 %v182_v6, %v125_v10  ;;  %v200_v13 = vpop.f32.mrb[3].mxu0 }
 0x11a   :  { %v189_v14 = vpack.c.bf16 %v126_v12, %v126_v12  ;;  %140 = vrot.lane.b32.xlu0 %v188_v11, %s343_s5  ;;  %138 = vst.msk [vmem:[#allocation8] sm:$0xf] %vm137_vm2, %v188_v11 }
 0x11c   :  { %139 = vst.msk [vmem:[#allocation8 + $0x4] sm:$0xf] %vm137_vm2, %v189_v14 }
 0x11d   :  { %292 = shalt.err (!%p289_p0)
}
 0x11e   :  { %s293_s9 = scalar_lea.hbm %s446_s3, 128 }
 0x11f   :  { %p294_p1 = scmp.ne.s32.totalorder %s446_s3, %s293_s9  ;;  %p297_p2 = scmp.lt.u32.totalorder %s293_s9, %s446_s3 }
 0x121   :  { %p299_p3 = pnand %p297_p2, %p294_p1 }
 0x123   :  { %302 = shalt.err (!%p299_p3)
}
 0x124   :  { %159 = dma.vmem_to_hbm [thread:$0]  %s154_s30, 128, %s446_s3, [#allocation4], %s334_s25, %s334_s25, %s335_s26  }
 0x125   :  { %142 = vrot.lane.b32.xlu0 %v189_v14, %s343_s5  ;;  %s344_s15 = smov [#allocation9]  }
 0x126   :  { %s165_s16 = sshll.u32 %s344_s15, 4  ;;  %s166_s16 = int_to_ptr.vmem [resolvable:$true] %s165_s16 }
 0x127   :  { %s303_s17 = scalar_lea.vmem %s166_s16, 128  ;;  %p308_p5 = scmp.lt.s32.totalorder %s166_s16, %s166_s16 }
 0x128   :  { %p304_p4 = scmp.ne.s32.totalorder %s166_s16, %s303_s17  ;;  %p309_p6 = scmp.lt.s32.totalorder %s303_s17, %s303_s17 }
 0x12a   :  { %p310_p7 = por %p309_p6, %p308_p5 }
 0x12c   :  { %p311_p8 = pnand %p310_p7, %p304_p4 }
 0x18c   :  { %v141_v15 = vpop.permute.xlu0 %140 }
 0x18d   :  { %146 = vst.msk [vmem:[#allocation9] sm:$0xf] %vm137_vm2, %v141_v15 }
 0x197   :  { %v143_v16 = vpop.permute.xlu0 %142 }
 0x198   :  { %147 = vst.msk [vmem:[#allocation9 + $0x4] sm:$0xf] %vm137_vm2, %v143_v16 }
 0x199   :  { %314 = shalt.err (!%p311_p8)
}
 0x19a   :  { %s315_s3 = scalar_lea.hbm %s447_s4, 128 }
 0x19b   :  { %p316_p9 = scmp.ne.s32.totalorder %s447_s4, %s315_s3  ;;  %p319_p10 = scmp.lt.u32.totalorder %s315_s3, %s447_s4 }
 0x19d   :  { %p321_p11 = pnand %p319_p10, %p316_p9 }
 0x19f   :  { %324 = shalt.err (!%p321_p11)
}
 0x1a0   :  { %171 = dma.vmem_to_hbm [thread:$0]  %s166_s16, 128, %s447_s4, [#allocation10], %s334_s25, %s334_s25, %s335_s26  }
 0x1a1   :  { %329 = dma.done.wait [#allocation4], 128  }
 0x1a2   :  { %330 = vsyncadd [#allocation4], 4294967168 }
 0x1a3   :  { %331 = dma.done.wait [#allocation10], 128  }
 0x1a4   :  { %332 = vsyncadd [#allocation10], 4294967168 }
 0x1a5   :  { %178 = vsyncpa [#allocation3], 1 }
 0x1a6   :  { %179 = vsyncpa [#allocation6], 1 }
 0x1a7   :  { %180 = vsyncpa [#allocation4], 1 }
 0x1a8   :  { %181 = vsyncpa [#allocation10], 1 }

</bundles_post_ra>
